<compile_context>
chip_gen: v7x
topology: tpu7x:2x2x1
jax: 0.10.0
libtpu: 0.0.40
codegen_flags: <defaults>
</compile_context>

<pallas_src>
import jax
import jax.numpy as jnp
from jax.experimental import pallas as pl
from jax.experimental.pallas import tpu as pltpu

_MIB = 1 << 20


def _concat_choices_kernel(*refs):
    """refs = (choice0_ref, ..., choiceN-1_ref, out_ref).

    Each input ref is a (block_b, H) VMEM tile; the output ref is
    (block_b, n*H).  Write each choice into its 128-aligned column slab with
    a static slice store (unmasked, lane-dense vst when H % 128 == 0).
    """
    *in_refs, o_ref = refs
    h = in_refs[0].shape[-1]
    for i, r in enumerate(in_refs):
        o_ref[:, i * h:(i + 1) * h] = r[...]


def _sublane_multiple(dtype):
    # 8 rows for 4-byte dtypes, 16 for bf16, 32 for int8.
    return max(8, 32 // jnp.dtype(dtype).itemsize)


def _round_up(x, m):
    return ((x + m - 1) // m) * m


def _vmem_budget_bytes():
    """(per-step live-block budget, vmem_limit_bytes or None) per generation."""
    try:
        cap = pltpu.get_tpu_info().vmem_capacity_bytes
    except Exception:
        cap = None
    if cap is None or cap <= 64 * _MIB:
        # v7x-class (64 MiB physical) or unknown: stay well under the 32 MiB
        # scoped default; do not raise the limit.
        return 12 * _MIB, None
    # v5e / v6e (128 MiB physical): bigger tiles hit the HBM roofline with
    # fewer ~0.35 us grid steps; raise the scoped limit to make room.
    return 32 * _MIB, 64 * _MIB


def choice_module_forward(immediate_output_dict, n_choices=2, block_b=None,
                          min_pallas_bytes=512 * 1024):
    """JAX/Pallas equivalent of ChoiceModule.forward (torch.cat along dim=1)."""
    reps = [immediate_output_dict[f"choice{i}rep"][0] for i in range(n_choices)]
    B, H = reps[0].shape
    dtype = reps[0].dtype
    # torch.cat would error on mismatched dtypes/shapes; don't silently promote.
    for r in reps:
        assert r.shape == (B, H), (r.shape, (B, H))
        assert r.dtype == dtype, (r.dtype, dtype)
    itemsize = jnp.dtype(dtype).itemsize
    total_bytes = n_choices * B * H * itemsize

    # XLA fallback: (a) tiny shapes where pallas_call launch / grid-step
    # overhead dominates the ~KiB of traffic and XLA can fuse the concat into
    # its consumer; (b) H not lane-aligned, where column stores would become
    # masked vst.msk with XLU shuffles — the worst case for a copy kernel.
    if total_bytes < min_pallas_bytes or H % 128 != 0:
        return jnp.concatenate(reps, axis=1)

    sub = _sublane_multiple(dtype)
    budget, vmem_limit = _vmem_budget_bytes()

    if block_b is None:
        # Live VMEM per grid step: n_choices input tiles + one (block_b, n*H)
        # output tile, each double-buffered:
        #   2 * (n*H + n*H) * block_b * itemsize = 4 * n * H * block_b * itemsize.
        per_row = 4 * n_choices * H * itemsize
        block_b = max(sub, (budget // per_row) // sub * sub)
        # Give v7x's second TensorCore work: at least 2 grid steps when the
        # batch is big enough to split (harmless ~0.35 us extra on 1-TC chips).
        if B >= 2 * sub:
            block_b = min(block_b, _round_up(pl.cdiv(B, 2), sub))
        # Never allocate a block larger than the (sublane-padded) batch.
        block_b = min(block_b, _round_up(B, sub))

    grid = (pl.cdiv(B, block_b),)

    in_specs = [
        pl.BlockSpec((block_b, H), lambda b: (b, 0)) for _ in range(n_choices)
    ]
    out_specs = pl.BlockSpec((block_b, n_choices * H), lambda b: (b, 0))

    cost = pl.CostEstimate(
        flops=0,
        transcendentals=0,
        bytes_accessed=2 * total_bytes,  # read every byte once, write it once
    )

    cp_kwargs = dict(dimension_semantics=("parallel",))
    if vmem_limit is not None:
        cp_kwargs["vmem_limit_bytes"] = vmem_limit

    # TODO(synk): for very large B*H an HBM->HBM DMA-only variant
    # (memory_space=pl.ANY inputs/output + per-choice make_async_copy into
    # out.at[:, i*H:(i+1)*H]) would remove the VMEM round trip entirely.

    out = pl.pallas_call(
        _concat_choices_kernel,
        out_shape=jax.ShapeDtypeStruct((B, n_choices * H), dtype),
        grid=grid,
        in_specs=in_specs,
        out_specs=out_specs,
        compiler_params=pltpu.CompilerParams(**cp_kwargs),
        cost_estimate=cost,
    )(*reps)
    return out


if __name__ == "__main__":
    # Small, TPU-friendly shapes: batch=8, hidden=128 per choice, n_choices=2.
    B, H, N_CHOICES = 8, 128, 2

    key = jax.random.PRNGKey(0)
    keys = jax.random.split(key, N_CHOICES)

    # Mimic the PyTorch input: a dict mapping 'choice{i}rep' -> sequence whose
    # element [0] is the (B, H) representation tensor.
    immediate_output_dict = {
        f"choice{i}rep": [jax.random.normal(keys[i], (B, H), dtype=jnp.float32)]
        for i in range(N_CHOICES)
    }

    # Force the Pallas path at this tiny demo shape (the default threshold
    # would otherwise route it to the jnp.concatenate bypass).
    logits = choice_module_forward(
        immediate_output_dict, n_choices=N_CHOICES, min_pallas_bytes=0
    )
    logits = jax.block_until_ready(logits)

    # Reference: plain-JAX concat along dim=1 (same semantics as torch.cat).
    ref = jnp.concatenate(
        [immediate_output_dict[f"choice{i}rep"][0] for i in range(N_CHOICES)],
        axis=1,
    )
    assert logits.shape == (B, N_CHOICES * H), logits.shape
    assert logits.dtype == ref.dtype
    assert bool(jnp.array_equal(logits, ref))

    # Also check the small-shape XLA bypass gives identical results.
    logits_bypass = jax.block_until_ready(
        choice_module_forward(immediate_output_dict, n_choices=N_CHOICES)
    )
    assert bool(jnp.array_equal(logits_bypass, ref))

    print("KERNEL_OK")
</pallas_src>

<mosaic_0001>
module attributes {stable_mosaic.version = 11 : i64} {
  func.func @_concat_choices_kernel(%arg0: i32, %arg1: memref<8x128xf32, #tpu.memory_space<vmem>>, %arg2: memref<8x128xf32, #tpu.memory_space<vmem>>, %arg3: memref<8x256xf32, #tpu.memory_space<vmem>>) attributes {dimension_semantics = [#tpu.dimension_semantics<parallel>], iteration_bounds = array<i64: 1>, scalar_prefetch = 0 : i64, scratch_operands = 0 : i64, tpu.core_type = #tpu.core_type<tc>, window_params = [{transform_indices = @transform_0, window_bounds = array<i64: 8, 128>}, {transform_indices = @transform_1, window_bounds = array<i64: 8, 128>}, {transform_indices = @transform_2, window_bounds = array<i64: 8, 256>}]} {
    %c0 = arith.constant 0 : index
    %c0_0 = arith.constant 0 : index
    %0 = vector.load %arg1[%c0, %c0_0] : memref<8x128xf32, #tpu.memory_space<vmem>>, vector<8x128xf32>
    %c0_1 = arith.constant 0 : index
    %c0_2 = arith.constant 0 : index
    %1 = vector.load %arg3[%c0_1, %c0_2] : memref<8x256xf32, #tpu.memory_space<vmem>>, vector<8x128xf32>
    tpu.vector_store %arg3[%c0_1, %c0_2], %0 {strides = array<i32>} : memref<8x256xf32, #tpu.memory_space<vmem>>, vector<8x128xf32>,
    %c0_3 = arith.constant 0 : index
    %c0_4 = arith.constant 0 : index
    %2 = vector.load %arg2[%c0_3, %c0_4] : memref<8x128xf32, #tpu.memory_space<vmem>>, vector<8x128xf32>
    %c0_5 = arith.constant 0 : index
    %c128 = arith.constant 128 : index
    %3 = vector.load %arg3[%c0_5, %c128] : memref<8x256xf32, #tpu.memory_space<vmem>>, vector<8x128xf32>
    tpu.vector_store %arg3[%c0_5, %c128], %2 {strides = array<i32>} : memref<8x256xf32, #tpu.memory_space<vmem>>, vector<8x128xf32>,
    return
  }
  func.func @transform_0(%arg0: i32) -> (i32, i32) {
    %c0_i32 = arith.constant 0 : i32
    %c0_i32_0 = arith.constant 0 : i32
    return %arg0, %c0_i32 : i32, i32
  }
  func.func @transform_1(%arg0: i32) -> (i32, i32) {
    %c0_i32 = arith.constant 0 : i32
    %c0_i32_0 = arith.constant 0 : i32
    return %arg0, %c0_i32 : i32, i32
  }
  func.func @transform_2(%arg0: i32) -> (i32, i32) {
    %c0_i32 = arith.constant 0 : i32
    %c0_i32_0 = arith.constant 0 : i32
    return %arg0, %c0_i32 : i32, i32
  }
}

</mosaic_0001>

<bundles_post_ra>
// kernel: tpu_custom_call.1
= control target key start
LH: loop header
LB: loop body
LE: loop exit
PB: predicated region body
PF: predicated region fallthrough
CT: control target
= control target key end

     0   :  { %7 = vsyncpa [#allocation3], 0  ;;  %s185_s0 = inlined_call_operand.hbm [shape: f32[8,128], index: 0, kind: input, shape index: {}]   ;;  %s186_s1 = inlined_call_operand.hbm [shape: f32[8,128], index: 1, kind: input, shape index: {}]   ;;  %s187_s2 = inlined_call_operand.hbm [shape: f32[8,256], index: 2, kind: output, shape index: {}]  }
   0x1   :  { %8 = vsyncpa [#allocation6], 0 }
   0x2   :  { %9 = vsyncpa [#allocation4], 0  ;;  %s131_s9 = smov [#allocation2]   ;;  %s132_s11 = smov [#allocation5]  }
   0x3   :  { %s16_s10 = sshll.u32 %s131_s9, 4  ;;  %s26_s12 = sshll.u32 %s132_s11, 4  ;;  %s17_s10 = int_to_ptr.vmem [resolvable:$true] %s16_s10  ;;  %s27_s12 = int_to_ptr.vmem [resolvable:$true] %s26_s12 }
   0x4   :  { %s59_s15 = scalar_lea.hbm %s185_s0, 128 }
   0x5   :  { %p60_p0 = scmp.ne.s32.totalorder %s185_s0, %s59_s15  ;;  %p63_p1 = scmp.lt.u32.totalorder %s59_s15, %s185_s0 }
   0x7   :  { %p65_p2 = pnand %p63_p1, %p60_p0 }
   0x9   :  { %68 = shalt.err (!%p65_p2)
}
   0xa   :  { %s69_s20 = scalar_lea.vmem %s17_s10, 128  ;;  %p74_p4 = scmp.lt.s32.totalorder %s17_s10, %s17_s10 }
   0xb   :  { %p70_p3 = scmp.ne.s32.totalorder %s17_s10, %s69_s20  ;;  %p75_p5 = scmp.lt.s32.totalorder %s69_s20, %s69_s20 }
   0xd   :  { %p76_p6 = por %p75_p5, %p74_p4 }
   0xf   :  { %p77_p7 = pnand %p76_p6, %p70_p3 }
  0x11   :  { %80 = shalt.err (!%p77_p7)
}
  0x12   :  { %19 = dma.hbm_to_vmem [thread:$0]  %s185_s0, 128, %s17_s10, [#allocation3]  }
  0x13   :  { %s81_s25 = scalar_lea.hbm %s186_s1, 128 }
  0x14   :  { %p82_p8 = scmp.ne.s32.totalorder %s186_s1, %s81_s25  ;;  %p85_p9 = scmp.lt.u32.totalorder %s81_s25, %s186_s1 }
  0x16   :  { %p87_p10 = pnand %p85_p9, %p82_p8 }
  0x18   :  { %90 = shalt.err (!%p87_p10)
}
  0x19   :  { %s91_s30 = scalar_lea.vmem %s27_s12, 128  ;;  %p96_p12 = scmp.lt.s32.totalorder %s27_s12, %s27_s12 }
  0x1a   :  { %p92_p11 = scmp.ne.s32.totalorder %s27_s12, %s91_s30  ;;  %p97_p13 = scmp.lt.s32.totalorder %s91_s30, %s91_s30 }
  0x1c   :  { %p98_p0 = por %p97_p13, %p96_p12 }
  0x1e   :  { %p99_p1 = pnand %p98_p0, %p92_p11 }
  0x20   :  { %102 = shalt.err (!%p99_p1)
}
  0x21   :  { %29 = dma.hbm_to_vmem [thread:$0]  %s186_s1, 128, %s27_s12, [#allocation6]  }
  0x22   :  { %125 = dma.done.wait [#allocation3], 128  }
  0x23   :  { %126 = vsyncadd [#allocation3], 4294967168 }
  0x24   :  { %127 = dma.done.wait [#allocation6], 128  }
  0x25   :  { %128 = vsyncadd [#allocation6], 4294967168  ;;  %s133_s4 = smov [#allocation7]   ;;  %v36_v0 = vld [vmem:[#allocation2] sm:$0xff]  ;;  %v38_v1 = vld [vmem:[#allocation5] sm:$0xff] }
  0x26   :  { %s46_s5 = sshll.u32 %s133_s4, 4  ;;  %37 = vst [vmem:[#allocation7] sm:$0xff] %v36_v0  ;;  %39 = vst [vmem:[#allocation7 + $0x8] sm:$0xff] %v38_v1  ;;  %s47_s5 = int_to_ptr.vmem [resolvable:$true] %s46_s5 }
  0x27   :  { %s103_s6 = scalar_lea.vmem %s47_s5, 256  ;;  %p108_p3 = scmp.lt.s32.totalorder %s47_s5, %s47_s5 }
  0x28   :  { %p104_p2 = scmp.ne.s32.totalorder %s47_s5, %s103_s6  ;;  %p109_p4 = scmp.lt.s32.totalorder %s103_s6, %s103_s6 }
  0x2a   :  { %p110_p5 = por %p109_p4, %p108_p3 }
  0x2c   :  { %p111_p6 = pnand %p110_p5, %p104_p2 }
  0x2e   :  { %114 = shalt.err (!%p111_p6)
}
  0x2f   :  { %s115_s8 = scalar_lea.hbm %s187_s2, 256 }
  0x30   :  { %p116_p7 = scmp.ne.s32.totalorder %s187_s2, %s115_s8  ;;  %p119_p8 = scmp.lt.u32.totalorder %s115_s8, %s187_s2 }
  0x32   :  { %p121_p9 = pnand %p119_p8, %p116_p7 }
  0x34   :  { %124 = shalt.err (!%p121_p9)
}
  0x35   :  { %49 = dma.vmem_to_hbm [thread:$0]  %s47_s5, 256, %s187_s2, [#allocation4]  }
  0x36   :  { %129 = dma.done.wait [#allocation4], 256  }
  0x37   :  { %130 = vsyncadd [#allocation4], 4294967040 }
  0x38   :  { %53 = vsyncpa [#allocation3], 1 }
  0x39   :  { %54 = vsyncpa [#allocation6], 1 }
  0x3a   :  { %55 = vsyncpa [#allocation4], 1 }

</bundles_post_ra>
